<compile_context>
chip_gen: v6e
topology: v6e:2x2x1
jax: 0.10.0
libtpu: 0.0.40
codegen_flags: <defaults>
</compile_context>

<pallas_src>
import functools

import jax
import jax.numpy as jnp
import numpy as np
from jax.experimental import pallas as pl
from jax.experimental.pallas import tpu as pltpu


def _round_up(n, m):
    return ((n + m - 1) // m) * m


def transformer_kernel(x_ref, w2_ref, bvec_ref, out_ref, *, batch_tile, seq_len):
    """One batch tile: fused rank-1 projections + per-row softmax reduction.

    x_ref:    (TB*Sp, D)  bf16   batch-major flattened input rows for this tile
    w2_ref:   (D, 2)      bf16   fused weights [W_emb @ w_att | W_emb @ w_fc]
    bvec_ref: (2, Sp)     f32    fused per-position biases [attention ; fc (+ b_fc)]
    out_ref:  (TB, 1)     f32    per-batch-row output
    """
    # Single small MXU pass producing both rank-1 projections for every row.
    p = jnp.dot(x_ref[...], w2_ref[...],
                preferred_element_type=jnp.float32)               # (TB*Sp, 2) f32
    # Sublane split: Sp % 8 == 0, so this is a pure reinterpretation (no relayout).
    p = p.reshape(batch_tile, seq_len, 2)                         # (TB, Sp, 2)

    logits = p[:, :, 0] + bvec_ref[0:1, :]                        # (TB, Sp)
    hv = p[:, :, 1] + bvec_ref[1:2, :]                            # (TB, Sp) = h @ w_fc + b_fc

    # Softmax over the sequence axis fused with the context/fc contraction:
    #   out[b] = sum_s softmax(logits)[b,s] * hv[b,s]
    m = jnp.max(logits, axis=1, keepdims=True)                    # (TB, 1)
    e = jnp.exp(logits - m)                                       # (TB, Sp)  (padding -> 0)
    num = jnp.sum(e * hv, axis=1, keepdims=True)                  # (TB, 1)
    den = jnp.sum(e, axis=1, keepdims=True)                       # (TB, 1)
    out_ref[...] = num * pl.reciprocal(den, approx=True)          # EUP recip, no VPU divide


def transformer_forward(x, params, *, batch_tile=256):
    B, S, D = x.shape

    # ---- wrapper-side algebraic fusion (all in f32) --------------------------------
    wvec = jnp.concatenate([params["watt"], params["wfc"]], axis=1)      # (H, 2)
    w2 = (params["wemb"] @ wvec).astype(jnp.bfloat16)                    # (D, 2)

    bias = params["bemb"][None, :] + params["pos"][:S, 0, :]             # (S, H)
    att_b = (bias @ params["watt"]).reshape(1, S)      # b_att dropped (softmax shift-invariant)
    fc_b = (bias @ params["wfc"] + params["bfc"]).reshape(1, S)          # b_fc folded in

    # ---- padding so every block is sublane-aligned ----------------------------------
    Sp = _round_up(S, 8)
    TB = _round_up(max(8, min(batch_tile, _round_up(B, 8))), 8)
    Bp = _round_up(B, TB)

    if Sp != S:
        att_b = jnp.pad(att_b, ((0, 0), (0, Sp - S)), constant_values=-1e30)  # -> zero attn
        fc_b = jnp.pad(fc_b, ((0, 0), (0, Sp - S)))
    bvec = jnp.concatenate([att_b, fc_b], axis=0)                         # (2, Sp) f32

    if Sp != S or Bp != B:
        x = jnp.pad(x, ((0, Bp - B), (0, Sp - S), (0, 0)))
    x_flat = x.reshape(Bp * Sp, D).astype(jnp.bfloat16)                   # stream x in bf16

    kernel = functools.partial(transformer_kernel, batch_tile=TB, seq_len=Sp)

    cost = pl.CostEstimate(
        flops=2 * Bp * Sp * D * 2 + 8 * Bp * Sp,
        transcendentals=Bp * Sp + Bp,
        bytes_accessed=Bp * Sp * D * 2 + D * 2 * 2 + 2 * Sp * 4 + Bp * 4,
    )

    out = pl.pallas_call(
        kernel,
        out_shape=jax.ShapeDtypeStruct((Bp, 1), jnp.float32),
        grid=(Bp // TB,),
        in_specs=[
            pl.BlockSpec((TB * Sp, D), lambda i: (i, 0)),   # x: streamed batch tiles
            pl.BlockSpec((D, 2), lambda i: (0, 0)),         # fused weights: VMEM-resident
            pl.BlockSpec((2, Sp), lambda i: (0, 0)),        # fused biases: VMEM-resident
        ],
        out_specs=pl.BlockSpec((TB, 1), lambda i: (i, 0)),
        compiler_params=pltpu.CompilerParams(
            dimension_semantics=("parallel",),               # megacore shard on v7x
            vmem_limit_bytes=32 * 1024 * 1024,               # headroom for v7x's 64 MiB VMEM
        ),
        cost_estimate=cost,
    )(x_flat, w2, bvec)

    return out[:B, 0]   # (B,) — matches the PyTorch .squeeze()


def reference_forward(x, params):
    """Pure-JAX (f32) mirror of the PyTorch forward pass."""
    S = x.shape[1]
    xt = jnp.transpose(x, (1, 0, 2))                                 # (S, B, D)
    h = xt @ params["wemb"] + params["bemb"]                         # (S, B, H)
    h = h + params["pos"][:S]                                        # + (S, 1, H)
    logits = h @ params["watt"] + params["batt"]                     # (S, B, 1)
    w = jax.nn.softmax(logits, axis=0)
    ctx = jnp.sum(h * w, axis=0)                                     # (B, H)
    out = ctx @ params["wfc"] + params["bfc"]                        # (B, 1)
    return jnp.squeeze(out)                                          # (B,)


def init_params(key, input_dim, hidden_size):
    k = jax.random.split(key, 8)
    s_emb = 1.0 / np.sqrt(input_dim)
    s_h = 1.0 / np.sqrt(hidden_size)
    return {
        # stored pre-transposed relative to torch.nn.Linear.weight
        "wemb": jax.random.uniform(k[0], (input_dim, hidden_size),
                                   jnp.float32, -s_emb, s_emb),
        "bemb": jax.random.uniform(k[1], (hidden_size,), jnp.float32, -s_emb, s_emb),
        "pos": jax.random.normal(k[2], (1000, 1, hidden_size), jnp.float32),
        "watt": jax.random.uniform(k[3], (hidden_size, 1), jnp.float32, -s_h, s_h),
        "batt": jax.random.uniform(k[4], (1,), jnp.float32, -s_h, s_h),
        "wfc": jax.random.uniform(k[5], (hidden_size, 1), jnp.float32, -s_h, s_h),
        "bfc": jax.random.uniform(k[6], (1,), jnp.float32, -s_h, s_h),
    }


if __name__ == "__main__":
    B, S, D, H = 16, 8, 16, 32          # batch, seq, input_dim, hidden_size

    key = jax.random.PRNGKey(0)
    k_x, k_p = jax.random.split(key)
    x = jax.random.normal(k_x, (B, S, D), jnp.float32)
    params = init_params(k_p, D, H)

    # batch_tile=8 -> grid=(2,): exercises the pipelined / parallel grid path.
    fwd = jax.jit(functools.partial(transformer_forward, batch_tile=8))
    out = jax.block_until_ready(fwd(x, params))

    ref = jax.block_until_ready(reference_forward(x, params))
    # bf16 x / fused-weight inputs (f32 accumulation) => relaxed tolerance vs f32 reference.
    np.testing.assert_allclose(np.asarray(out), np.asarray(ref), rtol=2e-2, atol=2e-2)
    assert out.shape == (B,)
    print("KERNEL_OK")
</pallas_src>

<mosaic_0001>
module attributes {stable_mosaic.version = 11 : i64} {
  func.func @transformer_kernel(%arg0: i32, %arg1: memref<64x16xbf16, #tpu.memory_space<vmem>>, %arg2: memref<16x2xbf16, #tpu.memory_space<vmem>>, %arg3: memref<2x8xf32, #tpu.memory_space<vmem>>, %arg4: memref<8x1xf32, #tpu.memory_space<vmem>>) attributes {dimension_semantics = [#tpu.dimension_semantics<parallel>], iteration_bounds = array<i64: 2>, scalar_prefetch = 0 : i64, scratch_operands = 0 : i64, tpu.core_type = #tpu.core_type<tc>, window_params = [{transform_indices = @transform_0, window_bounds = array<i64: 64, 16>}, {pipeline_mode = #tpu.pipeline_mode<synchronous>, transform_indices = @transform_1, window_bounds = array<i64: 16, 2>}, {pipeline_mode = #tpu.pipeline_mode<synchronous>, transform_indices = @transform_2, window_bounds = array<i64: 2, 8>}, {transform_indices = @transform_3, window_bounds = array<i64: 8, 1>}]} {
    %c0 = arith.constant 0 : index
    %c0_0 = arith.constant 0 : index
    %0 = vector.load %arg1[%c0, %c0_0] : memref<64x16xbf16, #tpu.memory_space<vmem>>, vector<64x16xbf16>
    %c0_1 = arith.constant 0 : index
    %c0_2 = arith.constant 0 : index
    %1 = vector.load %arg2[%c0_1, %c0_2] : memref<16x2xbf16, #tpu.memory_space<vmem>>, vector<16x2xbf16>
    %cst = arith.constant dense<0.000000e+00> : vector<64x2xf32>
    %2 = tpu.matmul %0, %1, %cst {dimension_numbers = #tpu.dot_dimension_numbers<[1], [0], [0], [1], [0, 0, 1, 1], [], []>} : vector<64x16xbf16>, vector<16x2xbf16>, vector<64x2xf32> -> vector<64x2xf32>
    %3 = vector.shape_cast %2 : vector<64x2xf32> to vector<8x8x2xf32>
    %4 = vector.extract_strided_slice %3 {offsets = [0, 0, 0], sizes = [8, 8, 1], strides = [1, 1, 1]} : vector<8x8x2xf32> to vector<8x8x1xf32>
    %5 = vector.shape_cast %4 : vector<8x8x1xf32> to vector<8x8xf32>
    %c0_3 = arith.constant 0 : index
    %c0_4 = arith.constant 0 : index
    %6 = vector.load %arg3[%c0_3, %c0_4] : memref<2x8xf32, #tpu.memory_space<vmem>>, vector<1x8xf32>
    %7 = vector.broadcast %6 : vector<1x8xf32> to vector<8x8xf32>
    %8 = arith.addf %5, %7 : vector<8x8xf32>
    %9 = vector.extract_strided_slice %3 {offsets = [0, 0, 1], sizes = [8, 8, 1], strides = [1, 1, 1]} : vector<8x8x2xf32> to vector<8x8x1xf32>
    %10 = vector.shape_cast %9 : vector<8x8x1xf32> to vector<8x8xf32>
    %c1 = arith.constant 1 : index
    %c0_5 = arith.constant 0 : index
    %11 = vector.load %arg3[%c1, %c0_5] : memref<2x8xf32, #tpu.memory_space<vmem>>, vector<1x8xf32>
    %12 = vector.broadcast %11 : vector<1x8xf32> to vector<8x8xf32>
    %13 = arith.addf %10, %12 : vector<8x8xf32>
    %cst_6 = arith.constant dense<0xFF800000> : vector<8xf32>
    %14 = vector.multi_reduction <maximumf>, %8, %cst_6 [1] : vector<8x8xf32> to vector<8xf32>
    %15 = vector.shape_cast %14 : vector<8xf32> to vector<8x1xf32>
    %16 = vector.broadcast %15 : vector<8x1xf32> to vector<8x8xf32>
    %17 = arith.subf %8, %16 : vector<8x8xf32>
    %18 = math.exp %17 : vector<8x8xf32>
    %19 = arith.mulf %18, %13 : vector<8x8xf32>
    %cst_7 = arith.constant dense<0.000000e+00> : vector<8xf32>
    %20 = vector.multi_reduction <add>, %19, %cst_7 [1] : vector<8x8xf32> to vector<8xf32>
    %21 = vector.shape_cast %20 : vector<8xf32> to vector<8x1xf32>
    %cst_8 = arith.constant dense<0.000000e+00> : vector<8xf32>
    %22 = vector.multi_reduction <add>, %18, %cst_8 [1] : vector<8x8xf32> to vector<8xf32>
    %23 = vector.shape_cast %22 : vector<8xf32> to vector<8x1xf32>
    %24 = tpu.reciprocal %23 {approx = true} : vector<8x1xf32> -> vector<8x1xf32>
    %25 = arith.mulf %21, %24 : vector<8x1xf32>
    %c0_9 = arith.constant 0 : index
    %c0_10 = arith.constant 0 : index
    %26 = vector.load %arg4[%c0_9, %c0_10] : memref<8x1xf32, #tpu.memory_space<vmem>>, vector<8x1xf32>
    tpu.vector_store %arg4[%c0_9, %c0_10], %25 {strides = array<i32>} : memref<8x1xf32, #tpu.memory_space<vmem>>, vector<8x1xf32>,
    return
  }
  func.func @transform_0(%arg0: i32) -> (i32, i32) {
    %c0_i32 = arith.constant 0 : i32
    %c0_i32_0 = arith.constant 0 : i32
    return %arg0, %c0_i32 : i32, i32
  }
  func.func @transform_1(%arg0: i32) -> (i32, i32) {
    %c0_i32 = arith.constant 0 : i32
    %c0_i32_0 = arith.constant 0 : i32
    %c0_i32_1 = arith.constant 0 : i32
    return %c0_i32, %c0_i32_0 : i32, i32
  }
  func.func @transform_2(%arg0: i32) -> (i32, i32) {
    %c0_i32 = arith.constant 0 : i32
    %c0_i32_0 = arith.constant 0 : i32
    %c0_i32_1 = arith.constant 0 : i32
    return %c0_i32, %c0_i32_0 : i32, i32
  }
  func.func @transform_3(%arg0: i32) -> (i32, i32) {
    %c0_i32 = arith.constant 0 : i32
    %c0_i32_0 = arith.constant 0 : i32
    return %arg0, %c0_i32 : i32, i32
  }
}

</mosaic_0001>

<bundles_post_ra>
// kernel: transformer_forward.1
= control target key start
LH: loop header
LB: loop body
LE: loop exit
PB: predicated region body
PF: predicated region fallthrough
CT: control target
= control target key end

     0   :  { %s822_s12 = smov 0   ;;  %s966_s0 = inlined_call_operand.vmem [shape: bf16[128,16], index: 0, kind: input, shape index: {}]   ;;  %s967_s1 = inlined_call_operand.vmem [shape: bf16[16,2], index: 1, kind: input, shape index: {}]   ;;  %s968_s2 = inlined_call_operand.vmem [shape: f32[2,8], index: 2, kind: input, shape index: {}]   ;;  %s969_s3 = inlined_call_operand.vmem [shape: f32[16,1], index: 3, kind: output, shape index: {}]  }
   0x1 LB: > { %s828_s13 = sadd.s32 4294967295, %s798_s12   ;;  %p723_p0 = scmp.ge.s32.totalorder %s798_s12, 1  ;;  %s798_s12 = sphi %s822_s12, %s13_s12  }
   0x2   : > { %p138_p1 = scmp.lt.s32.totalorder %s798_s12, 3 }
   0x4   : > { %p139_p2 = pnand %p723_p0, %p138_p1 }
   0x5   : > { %s724_s16 = sshll.u32 (!%p139_p2), %s828_s13, 3  ;;  %s801_s25 = smov (!%p139_p2), 127  }
   0x6   : > { %142 = sbr.rel (%p139_p2) target bundleno = 818 (0x332), region = 32  ;;  %p162_p3 = scmp.lt.s32.totalorder (!%p139_p2), %s724_s16, 15 }
   0x7   : > { %p167_p4 = scmp.lt.s32.totalorder (!%p139_p2), %s828_s13, 1 }
   0xb   : > { %v769_v0 = vld [vmem:[%s967_s1] sm:$0xff]   ;;  %s971_s16 = smov (!%p162_p3, %s724_s16), 15  ;;  %vm208_vm0 = vcmask 130048   ;;  %v800_v6 = vmov 0   ;;  %v354_v25 = vlaneseq  ;;  %vm388_vm1 = vcmask 1041409   ;;  %s973_s13 = smov (!%p167_p4, %s828_s13), 1 }
   0xc   : > { %v736_v1 = vld [vmem:[%s968_s2] ss:$0 sm:$0xff]  ;;  %745 = vmatprep.subr.bf16.mxu0 %v769_v0  ;;  %755 = vmatprep.subr.bf16.mxu1 %v769_v0  ;;  %s725_s19 = sshll.u32 %s971_s16, 2  ;;  %v737_v23 = vld [vmem:[%s968_s2 + $0x1] ss:$0 sm:$0xff]  ;;  %vm390_vm2 = vcmask 1042434  }
   0xd   : > { %746 = vmatpush3.bf16.msra.mxu0 %v769_v0  ;;  %756 = vmatpush3.bf16.msra.mxu1 %v769_v0  ;;  %s165_s22 = scalar_lea.vmem %s966_s0, %s725_s19  ;;  %v355_v27 = vand.u32 127, %v354_v25  ;;  %v884_v28 = vshrl.u32 %v354_v25, 7  ;;  %vm392_vm3 = vcmask 1043459   ;;  %vm394_vm4 = vcmask 1044484   ;;  %s726_s26 = sshll.u32 %s973_s13, 3 }
   0xe   : > { %293 = vbcast.lane.b32.xlu0 %v736_v1, 256  ;;  %v770_v2 = vld [vmem:[%s165_s22] sm:$0xff]   ;;  %v771_v3 = vld [vmem:[%s165_s22 + $0x10] sm:$0xff]   ;;  %v772_v4 = vld [vmem:[%s165_s22 + $0x8] sm:$0xff]   ;;  %767 = vset.pattern.permute.xlu1 %v800_v6  ;;  %vm396_vm5 = vcmask 1045509   ;;  %vm398_vm6 = vcmask 1046534   ;;  %s170_s29 = scalar_lea.vmem %s969_s3, %s726_s26 }
   0xf   : > { %747 = vmatprep.mubr.msk.bf16.mxu0 %vm208_vm0, %v770_v2  ;;  %751 = vmatprep.mubr.msk.bf16.mxu1 %vm208_vm0, %v771_v3  ;;  %v773_v5 = vld [vmem:[%s165_s22 + $0x18] sm:$0xff]   ;;  %v887_v31 = vsub.s32 %v355_v27, %v884_v28  ;;  %vm400_vm7 = vcmask 1047559   ;;  %vm403_vm8 = vcmask 64512   ;;  %v410_v62 = vsub.s32 0, %v884_v28 }
  0x10   : > { %748 = vmatmul.mubr.msk.bf16.vlgmr.msra.gmra.mxu0 %vm208_vm0, %v772_v4  ;;  %752 = vmatmul.mubr.msk.bf16.vlgmr.msra.gmra.mxu1 %vm208_vm0, %v773_v5  ;;  %v414_v63 = vsub.s32 1, %v884_v28  ;;  %v418_v0 = vsub.s32 2, %v884_v28  ;;  %v434_v1 = vsub.s32 6, %v884_v28  ;;  %v422_v2 = vsub.s32 3, %v884_v28 }
  0x11   : > { %768 = vset.pattern.permute.xlu0 %v800_v6  ;;  %v430_v25 = vsub.s32 5, %v884_v28  ;;  %vm664_vm9 = vcmask 7168  }
  0x80   : > { %v294_v7 = vpop.permute.xlu0 %293 }
  0xd0   : > { %v842_v8 = vpop.f32.mrf.mxu0  ;;  %v844_v9 = vpop.f32.mrf.mxu1 }
  0xd1   : > { %v847_v10 = vadd.f32 %v842_v8, %v294_v7  ;;  %v870_v21 = vadd.f32 %v844_v9, %v294_v7 }
  0xd2   : > { %v255_v11 = vpop.f32.mrf.mxu0  ;;  %v851_v13 = vpop.f32.mrf.mxu1 }
  0xd3   : > { %v849_v12 = vadd.f32 %v294_v7, %v255_v11  ;;  %337 = vperm.xlu1 %767, %v847_v10   ;;  %v863_v18 = vadd.f32 %v294_v7, %v851_v13 }
  0xd4   : > { %v854_v14 = vpop.f32.mrf.mxu0  ;;  %v860_v16 = vpop.f32.mrf.mxu1 }
  0xd5   : > { %v857_v15 = vadd.f32 %v854_v14, %v294_v7  ;;  %331 = vperm.xlu0 %768, %v849_v12   ;;  %v881_v24 = vadd.f32 %v860_v16, %v294_v7 }
  0xd6   : > { %v258_v17 = vpop.f32.mrf.mxu0  ;;  %v274_v20 = vpop.f32.mrf.mxu1 }
  0xd7   : > { %340 = vperm.xlu1 %767, %v857_v15   ;;  %v866_v19 = vadd.f32 %v294_v7, %v258_v17  ;;  %v873_v22 = vadd.f32 %v294_v7, %v274_v20  ;;  %v426_v7 = vsub.s32 4, %v884_v28 }
  0xd9   : > { %343 = vperm.xlu0 %768, %v863_v18  }
  0xdb   : > { %334 = vperm.xlu1 %767, %v866_v19  }
  0xdd   : > { %349 = vperm.xlu0 %768, %v870_v21  }
  0xdf   : > { %346 = vperm.xlu1 %767, %v873_v22  }
  0xe1   : > { %311 = vbcast.lane.b32.xlu0 %v737_v23, 256 }
  0xe3   : > { %352 = vperm.xlu1 %767, %v881_v24  }
 0x14e   : > { %v338_v26 = vpop.permute.xlu1 %337 }
 0x14f   : > { %v367_v36 = vrot.slane %v338_v26, %v887_v31 }
 0x150   : > { %v332_v29 = vpop.permute.xlu0 %331 }
 0x151   : > { %v359_v34 = vrot.slane %v332_v29, %v887_v31 }
 0x152   : > { %v341_v30 = vpop.permute.xlu1 %340 }
 0x153   : > { %v371_v38 = vrot.slane %v341_v30, %v887_v31 }
 0x154   : > { %v344_v32 = vpop.permute.xlu0 %343 }
 0x155   : > { %v375_v40 = vrot.slane %v344_v32, %v887_v31 }
 0x156   : > { %v335_v33 = vpop.permute.xlu1 %334 }
 0x157   : > { %v363_v35 = vrot.slane %v335_v33, %v887_v31 }
 0x158   : > { %v350_v37 = vpop.permute.xlu0 %349 }
 0x159   : > { %v389_v39 = vsel %vm388_vm1, %v363_v35, %v359_v34  ;;  %v383_v49 = vrot.slane %v350_v37, %v887_v31 }
 0x15a   : > { %v391_v41 = vsel %vm390_vm2, %v367_v36, %v389_v39  ;;  %v347_v42 = vpop.permute.xlu1 %346 }
 0x15b   : > { %v393_v43 = vsel %vm392_vm3, %v371_v38, %v391_v41  ;;  %v379_v44 = vrot.slane %v347_v42, %v887_v31 }
 0x15c   : > { %v395_v45 = vsel %vm394_vm4, %v375_v40, %v393_v43  ;;  %v312_v46 = vpop.permute.xlu0 %311 }
 0x15d   : > { %v397_v47 = vsel %vm396_vm5, %v379_v44, %v395_v45  ;;  %v314_v48 = vadd.f32 %v312_v46, %v255_v11  ;;  %v315_v53 = vadd.f32 %v312_v46, %v258_v17  ;;  %v316_v56 = vadd.f32 %v842_v8, %v312_v46 }
 0x15e   : > { %v353_v50 = vpop.permute.xlu1 %352  ;;  %v399_v52 = vsel %vm398_vm6, %v383_v49, %v397_v47  ;;  %v317_v57 = vadd.f32 %v854_v14, %v312_v46  ;;  %v318_v58 = vadd.f32 %v312_v46, %v851_v13  ;;  %v319_v59 = vadd.f32 %v312_v46, %v274_v20 }
 0x15f   : > { %v387_v51 = vrot.slane %v353_v50, %v887_v31  ;;  %480 = vrot.lane.b32.xlu0 %v314_v48, %s801_s25  ;;  %v320_v60 = vadd.f32 %v844_v9, %v312_v46  ;;  %v321_v61 = vadd.f32 %v860_v16, %v312_v46 }
 0x161   : > { %v401_v54 = vsel %vm400_vm7, %v387_v51, %v399_v52 }
 0x162   : > { %v404_v55 = vsel %vm403_vm8, %v401_v54, -inf }
 0x163   : > { %482 = vrot.lane.b32.xlu0 %v315_v53, %s801_s25  ;;  %405 = vmax.xlane.f32.xlu1 %v404_v55 }
 0x167   : > { %484 = vrot.lane.b32.xlu0 %v316_v56, %s801_s25 }
 0x16b   : > { %486 = vrot.lane.b32.xlu0 %v317_v57, %s801_s25 }
 0x16f   : > { %488 = vrot.lane.b32.xlu0 %v318_v58, %s801_s25 }
 0x173   : > { %490 = vrot.lane.b32.xlu0 %v319_v59, %s801_s25 }
 0x177   : > { %492 = vrot.lane.b32.xlu0 %v320_v60, %s801_s25 }
 0x17b   : > { %494 = vrot.lane.b32.xlu0 %v321_v61, %s801_s25 }
 0x1d1   : > { %v481_v16 = vpop.permute.xlu0 %480 }
 0x1d5   : > { %v483_v32 = vpop.permute.xlu0 %482 }
 0x1d9   : > { %v485_v36 = vpop.permute.xlu0 %484 }
 0x1ec   : > { %v406_v3 = vpop.xlane.xlu1 %405 }
 0x1ed   : > { %v411_v4 = vrot.slane %v406_v3, %v410_v62  ;;  %v415_v5 = vrot.slane %v406_v3, %v414_v63  ;;  %v419_v6 = vrot.slane %v406_v3, %v418_v0  ;;  %v435_v8 = vrot.slane %v406_v3, %v434_v1 }
 0x1ee   : > { %v423_v9 = vrot.slane %v406_v3, %v422_v2  ;;  %v427_v26 = vrot.slane %v406_v3, %v426_v7 }
 0x1ef   : > { %v448_v11 = vsub.f32 %v849_v12, %v411_v4  ;;  %v449_v13 = vsub.f32 %v866_v19, %v415_v5  ;;  %v450_v14 = vsub.f32 %v847_v10, %v419_v6  ;;  %v454_v17 = vsub.f32 %v870_v21, %v435_v8 }
 0x1f0   : > { %v451_v27 = vsub.f32 %v857_v15, %v423_v9  ;;  %v438_v12 = vsub.s32 7, %v884_v28  ;;  %v431_v19 = vrot.slane %v406_v3, %v430_v25  ;;  %v452_v10 = vsub.f32 %v863_v18, %v427_v26  ;;  %v487_v28 = vpop.permute.xlu0 %486 }
 0x1f1   : > { %v456_v20 = vmul.f32 1.442695, %v448_v11  ;;  %v458_v23 = vmul.f32 1.442695, %v449_v13  ;;  %v460_v29 = vmul.f32 1.442695, %v450_v14 }
 0x1f2   : > { %v468_v30 = vmul.f32 1.442695, %v454_v17  ;;  %v462_v33 = vmul.f32 1.442695, %v451_v27  ;;  %v453_v21 = vsub.f32 %v873_v22, %v431_v19  ;;  %v464_v34 = vmul.f32 1.442695, %v452_v10 }
 0x1f3   : > { %774 = vpow2.f32 %v456_v20  ;;  %v439_v35 = vrot.slane %v406_v3, %v438_v12 }
 0x1f4   : > { %776 = vpow2.f32 %v458_v23  ;;  %v466_v15 = vmul.f32 1.442695, %v453_v21  ;;  %v489_v42 = vpop.permute.xlu0 %488 }
 0x1f5   : > { %778 = vpow2.f32 %v460_v29  ;;  %v455_v37 = vsub.f32 %v881_v24, %v439_v35 }
 0x1f6   : > { %780 = vpow2.f32 %v468_v30 }
 0x1f7   : > { %782 = vpow2.f32 %v462_v33  ;;  %v470_v18 = vmul.f32 1.442695, %v455_v37 }
 0x1f8   : > { %784 = vpow2.f32 %v464_v34  ;;  %v491_v45 = vpop.permute.xlu0 %490 }
 0x1f9   : > { %786 = vpow2.f32 %v466_v15 }
 0x1fa   : > { %788 = vpow2.f32 %v470_v18 }
 0x1fc   : > { %v493_v49 = vpop.permute.xlu0 %492 }
 0x200   : > { %v775_v38 = vpop.eup %774  ;;  %v495_v54 = vpop.permute.xlu0 %494 }
 0x201   : > { %v777_v39 = vpop.eup %776  ;;  %596 = vperm.xlu0 %768, %v775_v38   ;;  %v504_v43 = vmul.f32 %v775_v38, %v481_v16 }
 0x202   : > { %599 = vperm.xlu1 %767, %v777_v39   ;;  %v779_v40 = vpop.eup %778  ;;  %v505_v51 = vmul.f32 %v777_v39, %v483_v32 }
 0x203   : > { %v781_v41 = vpop.eup %780  ;;  %v506_v24 = vmul.f32 %v779_v40, %v485_v36 }
 0x204   : > { %v783_v22 = vpop.eup %782  ;;  %v510_v50 = vmul.f32 %v781_v41, %v493_v49 }
 0x205   : > { %602 = vperm.xlu0 %768, %v779_v40   ;;  %v785_v44 = vpop.eup %784  ;;  %v507_v52 = vmul.f32 %v783_v22, %v487_v28 }
 0x206   : > { %614 = vperm.xlu1 %767, %v781_v41   ;;  %v787_v46 = vpop.eup %786  ;;  %v508_v47 = vmul.f32 %v785_v44, %v489_v42 }
 0x207   : > { %v789_v48 = vpop.eup %788  ;;  %v509_v53 = vmul.f32 %v787_v46, %v491_v45 }
 0x208   : > { %v511_v55 = vmul.f32 %v789_v48, %v495_v54 }
 0x209   : > { %605 = vperm.xlu0 %768, %v783_v22  }
 0x20a   : > { %521 = vperm.xlu1 %767, %v504_v43  }
 0x20d   : > { %608 = vperm.xlu0 %768, %v785_v44  }
 0x20e   : > { %527 = vperm.xlu1 %767, %v506_v24  }
 0x211   : > { %611 = vperm.xlu0 %768, %v787_v46  }
 0x212   : > { %533 = vperm.xlu1 %767, %v508_v47  }
 0x215   : > { %617 = vperm.xlu0 %768, %v789_v48  }
 0x216   : > { %539 = vperm.xlu1 %767, %v510_v50  }
 0x219   : > { %524 = vperm.xlu0 %768, %v505_v51  }
 0x21d   : > { %530 = vperm.xlu0 %768, %v507_v52  }
 0x221   : > { %536 = vperm.xlu0 %768, %v509_v53  }
 0x225   : > { %542 = vperm.xlu0 %768, %v511_v55  }
 0x27c   : > { %v597_v56 = vpop.permute.xlu0 %596 }
 0x27d   : > { %v600_v57 = vpop.permute.xlu1 %599  ;;  %v622_v62 = vrot.slane %v597_v56, %v887_v31 }
 0x27e   : > { %v626_v61 = vrot.slane %v600_v57, %v887_v31 }
 0x280   : > { %v603_v58 = vpop.permute.xlu0 %602  ;;  %v651_v3 = vsel %vm388_vm1, %v626_v61, %v622_v62 }
 0x281   : > { %v615_v60 = vpop.permute.xlu1 %614  ;;  %v630_v63 = vrot.slane %v603_v58, %v887_v31 }
 0x282   : > { %v646_v13 = vrot.slane %v615_v60, %v887_v31 }
 0x283   : > { %v652_v5 = vsel %vm390_vm2, %v630_v63, %v651_v3 }
 0x284   : > { %v606_v59 = vpop.permute.xlu0 %605 }
 0x285   : > { %v634_v1 = vrot.slane %v606_v59, %v887_v31  ;;  %v522_v4 = vpop.permute.xlu1 %521 }
 0x286   : > { %v547_v27 = vrot.slane %v522_v4, %v887_v31 }
 0x287   : > { %v653_v7 = vsel %vm392_vm3, %v634_v1, %v652_v5 }
 0x288   : > { %v609_v0 = vpop.permute.xlu0 %608 }
 0x289   : > { %v638_v2 = vrot.slane %v609_v0, %v887_v31  ;;  %v528_v16 = vpop.permute.xlu1 %527 }
 0x28a   : > { %v555_v12 = vrot.slane %v528_v16, %v887_v31 }
 0x28b   : > { %v654_v9 = vsel %vm394_vm4, %v638_v2, %v653_v7 }
 0x28c   : > { %v612_v6 = vpop.permute.xlu0 %611 }
 0x28d   : > { %v642_v8 = vrot.slane %v612_v6, %v887_v31  ;;  %v534_v30 = vpop.permute.xlu1 %533 }
 0x28e   : > { %v563_v34 = vrot.slane %v534_v30, %v887_v31 }
 0x28f   : > { %v655_v11 = vsel %vm396_vm5, %v642_v8, %v654_v9 }
 0x290   : > { %v618_v14 = vpop.permute.xlu0 %617  ;;  %v656_v20 = vsel %vm398_vm6, %v646_v13, %v655_v11 }
 0x291   : > { %v650_v17 = vrot.slane %v618_v14, %v887_v31  ;;  %v540_v36 = vpop.permute.xlu1 %539 }
 0x292   : > { %v571_v39 = vrot.slane %v540_v36, %v887_v31 }
 0x293   : > { %v657_v23 = vsel %vm400_vm7, %v650_v17, %v656_v20 }
 0x294   : > { %v525_v25 = vpop.permute.xlu0 %524  ;;  %v659_v26 = vsel %vm403_vm8, %v657_v23, 0.0 }
 0x295   : > { %v551_v29 = vrot.slane %v525_v25, %v887_v31  ;;  %660 = vadd.xlane.f32.xlu1 %v659_v26 }
 0x297   : > { %v576_v32 = vsel %vm388_vm1, %v551_v29, %v547_v27 }
 0x298   : > { %v531_v19 = vpop.permute.xlu0 %530  ;;  %v577_v33 = vsel %vm390_vm2, %v555_v12, %v576_v32 }
 0x299   : > { %v559_v10 = vrot.slane %v531_v19, %v887_v31 }
 0x29b   : > { %v578_v21 = vsel %vm392_vm3, %v559_v10, %v577_v33 }
 0x29c   : > { %v537_v35 = vpop.permute.xlu0 %536  ;;  %v579_v37 = vsel %vm394_vm4, %v563_v34, %v578_v21 }
 0x29d   : > { %v567_v15 = vrot.slane %v537_v35, %v887_v31 }
 0x29f   : > { %v580_v38 = vsel %vm396_vm5, %v567_v15, %v579_v37 }
 0x2a0   : > { %v543_v28 = vpop.permute.xlu0 %542  ;;  %v581_v40 = vsel %vm398_vm6, %v571_v39, %v580_v38 }
 0x2a1   : > { %v575_v18 = vrot.slane %v543_v28, %v887_v31 }
 0x2a3   : > { %v582_v41 = vsel %vm400_vm7, %v575_v18, %v581_v40 }
 0x2a4   : > { %v584_v22 = vsel %vm403_vm8, %v582_v41, 0.0 }
 0x2a5   : > { %585 = vadd.xlane.f32.xlu0 %v584_v22 }
 0x31e   : > { %v661_v42 = vpop.xlane.xlu1 %660 }
 0x31f   : > { %790 = vrcp.f32 %v661_v42 }
 0x32c   : > { %v791_v43 = vpop.eup %790 }
 0x32e   : > { %v586_v44 = vpop.xlane.xlu0 %585 }
 0x32f   : > { %v663_v31 = vmul.f32 %v791_v43, %v586_v44 }
 0x331   : > { %665 = vst.msk [vmem:[%s170_s29] sm:$0xff] %vm664_vm9, %v663_v31 }
 0x332 PF: > { %s13_s12 = sadd.s32 1, %s798_s12  }
 0x333   : > { %p10_p5 = scmp.ge.s32.totalorder %s13_s12, 4  }
 0x335   :  { %12 = sbr.rel (!%p10_p5) target bundleno = 1 (0x1), region = 62 }

</bundles_post_ra>
